<compile_context>
chip_gen: v5e
topology: v5e:2x2
jax: 0.10.0
libtpu: 0.0.40
codegen_flags: <defaults>
</compile_context>

<pallas_src>
import jax
import jax.numpy as jnp
from jax.experimental import pallas as pl
from jax.experimental.pallas import tpu as pltpu


def _round_up(x: int, m: int) -> int:
    return ((x + m - 1) // m) * m


def _chip_tile_config():
    """Pick (tm, tn, tk, vmem_limit) from the local chip's VMEM capacity."""
    try:
        vmem_bytes = pltpu.get_tpu_info().vmem_capacity_bytes
    except Exception:
        vmem_bytes = 64 << 20  # conservative fallback (v7x-sized VMEM)
    if vmem_bytes <= (64 << 20):
        # v7x: MXU/HBM balance ~310 flop/byte, only 64 MiB VMEM per TC.
        return dict(tm=1024, tn=1024, tk=512, vmem_limit=48 << 20)
    # 128 MiB VMEM chips (v5e / v6e). v6e has the worst flops:bandwidth ratio
    # (~680 flop/byte) and needs the widest tiles; v5e is already compute-bound
    # at this size and simply gets extra operand reuse.
    return dict(tm=1536, tn=1536, tk=512, vmem_limit=64 << 20)


def _in_spec(block_shape, index_map, buffers):
    if buffers is None:
        return pl.BlockSpec(block_shape, index_map)
    return pl.BlockSpec(block_shape, index_map, pipeline_mode=pl.Buffered(buffers))


# ----------------------------------------------------------------------------
# Kernels
# ----------------------------------------------------------------------------
def _linear_relu_kernel_f32(x_ref, w_ref, b_ref, o_ref):
    """f32 output: accumulate directly into the K-resident output block."""
    k = pl.program_id(2)

    @pl.when(k == 0)
    def _init():
        o_ref[...] = jnp.zeros_like(o_ref)

    o_ref[...] += jnp.dot(
        x_ref[...], w_ref[...], preferred_element_type=jnp.float32
    )

    @pl.when(k == pl.num_programs(2) - 1)
    def _epilogue():
        o_ref[...] = jnp.maximum(o_ref[...] + b_ref[...], 0.0)


def _linear_relu_kernel_acc(x_ref, w_ref, b_ref, o_ref, acc_ref):
    """Non-f32 output: f32 VMEM scratch accumulator, cast in the epilogue."""
    k = pl.program_id(2)

    @pl.when(k == 0)
    def _init():
        acc_ref[...] = jnp.zeros_like(acc_ref)

    acc_ref[...] += jnp.dot(
        x_ref[...], w_ref[...], preferred_element_type=jnp.float32
    )

    @pl.when(k == pl.num_programs(2) - 1)
    def _epilogue():
        out = jnp.maximum(acc_ref[...] + b_ref[...], 0.0)
        o_ref[...] = out.astype(o_ref.dtype)


# ----------------------------------------------------------------------------
# Module-like wrapper (caches padded / bf16 weight & bias once)
# ----------------------------------------------------------------------------
class LinearReLU:
    """Pallas analogue of nn.Sequential(nn.Linear(in, out), nn.ReLU())."""

    def __init__(self, weight, bias, *, tm=None, tn=None, tk=None,
                 input_buffers=None):
        K, N = weight.shape
        assert bias.shape == (N,), "bias must be (output_size,)"
        cfg = _chip_tile_config()
        self.N, self.K = N, K
        self.input_buffers = input_buffers
        self.vmem_limit = cfg["vmem_limit"]

        # Lane-dense tiles: N, K multiples of 128; M multiple of 8 (per call).
        self.tm_max = tm or cfg["tm"]
        self.tn = tn or min(cfg["tn"], _round_up(N, 128))
        self.tk = tk or min(cfg["tk"], _round_up(K, 128))
        self.Np = _round_up(N, self.tn)
        self.Kp = _round_up(K, self.tk)

        # One-time weight prep: pad to tile multiples + cast to bf16 MXU feed.
        w = weight
        if (K, N) != (self.Kp, self.Np):
            w = jnp.pad(w, ((0, self.Kp - K), (0, self.Np - N)))
        self.w = w if w.dtype == jnp.bfloat16 else w.astype(jnp.bfloat16)

        b = bias
        if N != self.Np:
            b = jnp.pad(b, (0, self.Np - N))
        self.b = b.reshape(1, self.Np).astype(jnp.float32)

    def __call__(self, x):
        M, K = x.shape
        assert K == self.K, "x inner dim must match weight"

        tm = min(self.tm_max, _round_up(M, 8))
        Mp = _round_up(M, tm)

        # Activations: pad/cast only when needed (no-op for prepared inputs).
        xp = x
        if (M, K) != (Mp, self.Kp):
            xp = jnp.pad(xp, ((0, Mp - M), (0, self.Kp - K)))
        if xp.dtype != jnp.bfloat16:
            xp = xp.astype(jnp.bfloat16)

        # Megacore: if M has a single block, split N so a "parallel" axis has
        # >= 2 blocks (keeps tn a multiple of 128 and a divisor of Np).
        tn = self.tn
        while Mp // tm == 1 and self.Np // tn < 2 and tn % 256 == 0:
            tn //= 2
        tk = self.tk

        grid = (Mp // tm, self.Np // tn, self.Kp // tk)
        n_i, n_j, _ = grid

        out_dtype = x.dtype
        use_direct = out_dtype == jnp.float32
        kernel = _linear_relu_kernel_f32 if use_direct else _linear_relu_kernel_acc
        scratch = [] if use_direct else [pltpu.VMEM((tm, tn), jnp.float32)]

        # Honest streamed-traffic estimate: x is re-read per N strip, weight
        # per M strip; output written once.
        flops = 2 * M * K * self.N
        bytes_accessed = (
            Mp * self.Kp * 2 * n_j          # x (bf16), read n_j times
            + self.Kp * self.Np * 2 * n_i   # weight (bf16), read n_i times
            + self.Np * 4 * n_i             # bias strips
            + Mp * self.Np * jnp.dtype(out_dtype).itemsize
        )

        out_padded = pl.pallas_call(
            kernel,
            out_shape=jax.ShapeDtypeStruct((Mp, self.Np), out_dtype),
            grid_spec=pltpu.PrefetchScalarGridSpec(
                num_scalar_prefetch=0,
                grid=grid,
                in_specs=[
                    _in_spec((tm, tk), lambda i, j, k: (i, k), self.input_buffers),
                    _in_spec((tk, tn), lambda i, j, k: (k, j), self.input_buffers),
                    pl.BlockSpec((1, tn), lambda i, j, k: (0, j)),
                ],
                out_specs=pl.BlockSpec((tm, tn), lambda i, j, k: (i, j)),
                scratch_shapes=scratch,
            ),
            compiler_params=pltpu.CompilerParams(
                dimension_semantics=("parallel", "parallel", "arbitrary"),
                vmem_limit_bytes=self.vmem_limit,
            ),
            cost_estimate=pl.CostEstimate(
                flops=flops, transcendentals=0, bytes_accessed=int(bytes_accessed)
            ),
        )(xp, self.w, self.b)

        return out_padded[:M, :self.N]


def forward_pass(x, weight, bias, **kwargs):
    """One-shot functional form: relu(x @ weight + bias)."""
    return LinearReLU(weight, bias, **kwargs)(x)


if __name__ == "__main__":
    key = jax.random.PRNGKey(0)
    batch, input_size, output_size = 8, 32, 64

    kx, kw, kb = jax.random.split(key, 3)
    x = jax.random.normal(kx, (batch, input_size), dtype=jnp.float32)
    # nn.Linear(input_size, output_size) init ranges; weight stored transposed (in, out).
    bound = 1.0 / (input_size ** 0.5)
    weight = jax.random.uniform(
        kw, (input_size, output_size), minval=-bound, maxval=bound, dtype=jnp.float32
    )
    bias = jax.random.uniform(
        kb, (output_size,), minval=-bound, maxval=bound, dtype=jnp.float32
    )

    # Module-style usage: weight prepared (padded + bf16) once, reused per call.
    model = LinearReLU(weight, bias)
    y = model(x)
    jax.block_until_ready(y)

    # Reference (f32) check; tolerance accounts for bf16 MXU inputs with f32 accumulation.
    y_ref = jnp.maximum(x @ weight + bias[None, :], 0.0)
    assert y.shape == y_ref.shape, "shape mismatch vs reference"
    assert jnp.allclose(y, y_ref, atol=3e-2, rtol=3e-2), "mismatch vs reference"

    print("KERNEL_OK")
</pallas_src>

<mosaic_0001>
module attributes {stable_mosaic.version = 11 : i64} {
  func.func @_linear_relu_kernel_f32(%arg0: i32, %arg1: i32, %arg2: i32, %arg3: memref<8x128xbf16, #tpu.memory_space<vmem>>, %arg4: memref<128x128xbf16, #tpu.memory_space<vmem>>, %arg5: memref<1x128xf32, #tpu.memory_space<vmem>>, %arg6: memref<8x128xf32, #tpu.memory_space<vmem>>) attributes {dimension_semantics = [#tpu.dimension_semantics<parallel>, #tpu.dimension_semantics<parallel>, #tpu.dimension_semantics<arbitrary>], iteration_bounds = array<i64: 1, 1, 1>, scalar_prefetch = 0 : i64, scratch_operands = 0 : i64, tpu.core_type = #tpu.core_type<tc>, window_params = [{transform_indices = @transform_0, window_bounds = array<i64: 8, 128>}, {transform_indices = @transform_1, window_bounds = array<i64: 128, 128>}, {transform_indices = @transform_2, window_bounds = array<i64: 1, 128>}, {transform_indices = @transform_3, window_bounds = array<i64: 8, 128>}]} {
    %c0_i32 = arith.constant 0 : i32
    %0 = arith.cmpi eq, %arg2, %c0_i32 : i32
    %1 = arith.extui %0 : i1 to i32
    %c0_i32_0 = arith.constant 0 : i32
    %2 = arith.cmpi ne, %1, %c0_i32_0 : i32
    scf.if %2 {
      %cst_10 = arith.constant 0.000000e+00 : f32
      %12 = vector.broadcast %cst_10 : f32 to vector<8x128xf32>
      %c0_11 = arith.constant 0 : index
      %c0_12 = arith.constant 0 : index
      %13 = vector.load %arg6[%c0_11, %c0_12] : memref<8x128xf32, #tpu.memory_space<vmem>>, vector<8x128xf32>
      tpu.vector_store %arg6[%c0_11, %c0_12], %12 {strides = array<i32>} : memref<8x128xf32, #tpu.memory_space<vmem>>, vector<8x128xf32>,
    } else {
    }
    %c0 = arith.constant 0 : index
    %c0_1 = arith.constant 0 : index
    %3 = vector.load %arg6[%c0, %c0_1] : memref<8x128xf32, #tpu.memory_space<vmem>>, vector<8x128xf32>
    %c0_2 = arith.constant 0 : index
    %c0_3 = arith.constant 0 : index
    %4 = vector.load %arg3[%c0_2, %c0_3] : memref<8x128xbf16, #tpu.memory_space<vmem>>, vector<8x128xbf16>
    %c0_4 = arith.constant 0 : index
    %c0_5 = arith.constant 0 : index
    %5 = vector.load %arg4[%c0_4, %c0_5] : memref<128x128xbf16, #tpu.memory_space<vmem>>, vector<128x128xbf16>
    %cst = arith.constant dense<0.000000e+00> : vector<8x128xf32>
    %6 = tpu.matmul %4, %5, %cst {dimension_numbers = #tpu.dot_dimension_numbers<[1], [0], [0], [1], [0, 0, 1, 1], [], []>} : vector<8x128xbf16>, vector<128x128xbf16>, vector<8x128xf32> -> vector<8x128xf32>
    %7 = arith.addf %3, %6 : vector<8x128xf32>
    %c0_6 = arith.constant 0 : index
    %c0_7 = arith.constant 0 : index
    %8 = vector.load %arg6[%c0_6, %c0_7] : memref<8x128xf32, #tpu.memory_space<vmem>>, vector<8x128xf32>
    tpu.vector_store %arg6[%c0_6, %c0_7], %7 {strides = array<i32>} : memref<8x128xf32, #tpu.memory_space<vmem>>, vector<8x128xf32>,
    %c0_i32_8 = arith.constant 0 : i32
    %9 = arith.cmpi eq, %arg2, %c0_i32_8 : i32
    %10 = arith.extui %9 : i1 to i32
    %c0_i32_9 = arith.constant 0 : i32
    %11 = arith.cmpi ne, %10, %c0_i32_9 : i32
    scf.if %11 {
      %c0_10 = arith.constant 0 : index
      %c0_11 = arith.constant 0 : index
      %12 = vector.load %arg6[%c0_10, %c0_11] : memref<8x128xf32, #tpu.memory_space<vmem>>, vector<8x128xf32>
      %c0_12 = arith.constant 0 : index
      %c0_13 = arith.constant 0 : index
      %13 = vector.load %arg5[%c0_12, %c0_13] : memref<1x128xf32, #tpu.memory_space<vmem>>, vector<1x128xf32>
      %14 = vector.broadcast %13 : vector<1x128xf32> to vector<8x128xf32>
      %15 = arith.addf %12, %14 : vector<8x128xf32>
      %cst_14 = arith.constant 0.000000e+00 : f32
      %16 = vector.broadcast %cst_14 : f32 to vector<8x128xf32>
      %17 = arith.maximumf %15, %16 : vector<8x128xf32>
      %c0_15 = arith.constant 0 : index
      %c0_16 = arith.constant 0 : index
      %18 = vector.load %arg6[%c0_15, %c0_16] : memref<8x128xf32, #tpu.memory_space<vmem>>, vector<8x128xf32>
      tpu.vector_store %arg6[%c0_15, %c0_16], %17 {strides = array<i32>} : memref<8x128xf32, #tpu.memory_space<vmem>>, vector<8x128xf32>,
    } else {
    }
    return
  }
  func.func @transform_0(%arg0: i32, %arg1: i32, %arg2: i32) -> (i32, i32) {
    %c0_i32 = arith.constant 0 : i32
    return %arg0, %arg2 : i32, i32
  }
  func.func @transform_1(%arg0: i32, %arg1: i32, %arg2: i32) -> (i32, i32) {
    %c0_i32 = arith.constant 0 : i32
    return %arg2, %arg1 : i32, i32
  }
  func.func @transform_2(%arg0: i32, %arg1: i32, %arg2: i32) -> (i32, i32) {
    %c0_i32 = arith.constant 0 : i32
    %c0_i32_0 = arith.constant 0 : i32
    return %c0_i32, %arg1 : i32, i32
  }
  func.func @transform_3(%arg0: i32, %arg1: i32, %arg2: i32) -> (i32, i32) {
    %c0_i32 = arith.constant 0 : i32
    return %arg0, %arg1 : i32, i32
  }
}

</mosaic_0001>

<bundles_post_ra>
// kernel: tpu_custom_call.1
= control target key start
LH: loop header
LB: loop body
LE: loop exit
PB: predicated region body
PF: predicated region fallthrough
CT: control target
= control target key end

     0   :  { %8 = vsyncpa [#allocation3], 0  ;;  %s322_s0 = inlined_call_operand.hbm [shape: bf16[8,128], index: 0, kind: input, shape index: {}]   ;;  %s323_s1 = inlined_call_operand.hbm [shape: bf16[128,128], index: 1, kind: input, shape index: {}]   ;;  %s324_s2 = inlined_call_operand.vmem [shape: f32[1,128], index: 2, kind: input, shape index: {}]   ;;  %s325_s3 = inlined_call_operand.hbm [shape: f32[8,128], index: 3, kind: output, shape index: {}]  }
   0x1   :  { %9 = vsyncpa [#allocation6], 0 }
   0x2   :  { %10 = vsyncpa [#allocation4], 0  ;;  %s16_s14 = sshll.u32 %s322_s0, 4  ;;  %s285_s15 = smov [#allocation2]   ;;  %s17_s14 = int_to_ptr.hbm [resolvable:$true] %s16_s14 }
   0x3   :  { %s18_s16 = sshll.u32 %s285_s15, 4  ;;  %s26_s19 = sshll.u32 %s323_s1, 4  ;;  %s19_s16 = int_to_ptr.vmem [resolvable:$true] %s18_s16  ;;  %s27_s19 = int_to_ptr.hbm [resolvable:$true] %s26_s19 }
   0x4   :  { %21 = dma.hbm_to_vmem [thread:$0]  %s17_s14, 64, %s19_s16, [#allocation3]  }
   0x5   :  { %s286_s20 = smov [#allocation5]   ;;  %s287_s22 = smov 64  }
   0x6   :  { %s28_s21 = sshll.u32 %s286_s20, 4  ;;  %s288_s23 = smov 4   ;;  %s29_s21 = int_to_ptr.vmem [resolvable:$true] %s28_s21 }
   0x7   :  { %34 = dma.hbm_to_vmem [thread:$0]  %s27_s19, 1024, %s29_s21, [#allocation6], %s287_s22, %s287_s22, %s288_s23  }
   0x8   :  { %279 = dma.done.wait [#allocation3], 64  }
   0x9   :  { %280 = vsyncadd [#allocation3], 4294967232 }
   0xa   :  { %281 = dma.done.wait [#allocation6], 1024  }
   0xb   :  { %282 = vsyncadd [#allocation6], 4294966272  ;;  %v199_v0 = vld [vmem:[#allocation5 + $0x38] sm:$0xff]  ;;  %v198_v1 = vld [vmem:[#allocation5 + $0x30] sm:$0xff]  ;;  %s289_s24 = smov [#allocation7]   ;;  %s149_s28 = sshll.u32 %s325_s3, 4  ;;  %s150_s28 = int_to_ptr.hbm [resolvable:$true] %s149_s28 }
   0xc   :  { %116 = vmatpush.bf16.msra.mxu0 %v199_v0  ;;  %v197_v2 = vld [vmem:[#allocation5 + $0x28] sm:$0xff]  ;;  %v196_v3 = vld [vmem:[#allocation5 + $0x20] sm:$0xff]  ;;  %v195_v4 = vld [vmem:[#allocation5 + $0x18] sm:$0xff]  ;;  %s147_s25 = sshll.u32 %s289_s24, 4  ;;  %s148_s25 = int_to_ptr.vmem [resolvable:$true] %s147_s25 }
   0xd   :  { %v194_v5 = vld [vmem:[#allocation5 + $0x10] sm:$0xff]  ;;  %v193_v6 = vld [vmem:[#allocation5 + $0x8] sm:$0xff]  ;;  %v192_v7 = vld [vmem:[#allocation5] sm:$0xff] }
   0xe   :  { %v51_v8 = vld [vmem:[#allocation2] sm:$0xf] }
   0xf   :  { %v206_v9 = vld [vmem:[%s324_s2] ss:$0 sm:$0xff] }
  0x10   :  { %117 = vmatpush.bf16.msra.mxu0 %v198_v1 }
  0x14   :  { %118 = vmatpush.bf16.msra.mxu0 %v197_v2 }
  0x18   :  { %119 = vmatpush.bf16.msra.mxu0 %v196_v3 }
  0x1c   :  { %120 = vmatpush.bf16.msra.mxu0 %v195_v4 }
  0x20   :  { %121 = vmatpush.bf16.msra.mxu0 %v194_v5 }
  0x24   :  { %122 = vmatpush.bf16.msra.mxu0 %v193_v6 }
  0x28   :  { %123 = vmatpush.bf16.msra.mxu0 %v192_v7 }
  0x2b   :  { %124 = vmatmul.bf16.vlgmr.msra.gmra.mxu0 %v51_v8 }
  0xa8   :  { %v125_v10 = vpop.f32.mrf.mxu0 }
  0xa9   :  { %v139_v11 = vadd.f32 %v206_v9, %v125_v10 }
  0xab   :  { %v140_v12 = vmax.f32 %v139_v11, 0.0 }
  0xad   :  { %141 = vst [vmem:[#allocation7] sm:$0xff] %v140_v12 }
  0xae   :  { %152 = dma.vmem_to_hbm [thread:$0]  %s148_s25, 128, %s150_s28, [#allocation4]  }
  0xb0   :  { %v127_v13 = vpop.f32.mrf.mxu0 }
  0xb1   :  { %283 = dma.done.wait [#allocation4], 128  }
  0xb2   :  { %284 = vsyncadd [#allocation4], 4294967168 }
  0xb3   :  { %157 = vsyncpa [#allocation3], 1 }
  0xb4   :  { %158 = vsyncpa [#allocation6], 1 }
  0xb5   :  { %159 = vsyncpa [#allocation4], 1 }

</bundles_post_ra>
